<compile_context>
chip_gen: v5e
topology: v5e:2x2
jax: 0.10.0
libtpu: 0.0.40
codegen_flags: <defaults>
</compile_context>

<pallas_src>
import functools

import jax
import jax.numpy as jnp
from jax import lax
from jax.experimental import pallas as pl
from jax.experimental.pallas import tpu as pltpu


_LANE = 128                     # lane width (last-dim tiling unit)
_SUBLANE = 8                    # sublane tiling unit
_TB_MAX = 512                   # max output rows per grid step
_UNROLL = 8                     # fori_loop unroll factor
_MAX_ROWS_PER_CALL = 32768      # caps scalar-prefetched idx SMEM at 128 KiB


def _round_up(x, m):
    return ((x + m - 1) // m) * m


@functools.lru_cache(maxsize=None)
def _vmem_capacity_bytes() -> int:
    """Per-core VMEM capacity; conservative fallback if the query fails."""
    try:
        return int(pltpu.get_tpu_info().vmem_capacity_bytes)
    except Exception:
        return 64 * 1024 * 1024     # v7x per-TC size (most restrictive)


def _pick_tile(n8):
    """Largest tile <= _TB_MAX keeping padding waste <= 12.5% of the batch."""
    for tb in (512, 256, 128, 64, 32, 16, 8):
        if tb <= _TB_MAX and tb <= n8 and (_round_up(n8, tb) - n8) * 8 <= n8:
            return tb
    return _SUBLANE


# ----------------------------------------------------------------------------
# Kernels (always operate on a lane-dense 32-bit view of the table)
# ----------------------------------------------------------------------------
def _gather_vmem_kernel(idx_ref, z_ref, out_ref):
    """idx_ref: SMEM (b_pad,) int32 (scalar-prefetched);
    z_ref: VMEM (nsample, width32) single-buffered table;
    out_ref: VMEM (tb, width32) output tile."""
    tb = out_ref.shape[0]
    base = pl.program_id(0) * tb

    def body(r, carry):
        row = idx_ref[base + r]                              # scalar read (SMEM)
        out_ref[pl.ds(r, 1), :] = z_ref[pl.ds(row, 1), :]    # dynamic row gather
        return carry

    lax.fori_loop(0, tb, body, 0, unroll=_UNROLL)


def _gather_hbm_kernel(idx_ref, z_hbm, out_ref, sem):
    """Large-table / small-batch path: z stays in HBM (pl.ANY); only the
    requested rows are DMA'd straight into the pipelined output tile."""
    tb = out_ref.shape[0]
    base = pl.program_id(0) * tb

    def issue(r, carry):
        row = idx_ref[base + r]
        pltpu.make_async_copy(z_hbm.at[row], out_ref.at[r], sem).start()
        return carry

    lax.fori_loop(0, tb, issue, 0, unroll=_UNROLL)

    # Single aggregate wait: the DMA semaphore accumulates bytes and the tb
    # per-row copies above add up to exactly one full output tile.
    pltpu.make_async_copy(out_ref, out_ref, sem).wait()


# ----------------------------------------------------------------------------
# pallas_call wrapper
# ----------------------------------------------------------------------------
@functools.partial(jax.jit, static_argnames=("tb", "use_hbm"))
def _gather_rows(z32, idx_pad, *, tb, use_hbm):
    """z32: (nsample, width32) 32-bit table view; idx_pad: (b_pad,) int32 with
    b_pad a multiple of tb and values in range.  Returns z32[idx_pad]."""
    nsample, width = z32.shape
    b_pad = idx_pad.shape[0]
    grid = (b_pad // tb,)

    out_tile_bytes = tb * width * 4
    table_bytes = nsample * width * 4
    cap = _vmem_capacity_bytes()

    out_spec = pl.BlockSpec((tb, width), lambda i, idx_ref: (i, 0))

    if use_hbm:
        kernel = _gather_hbm_kernel
        grid_spec = pltpu.PrefetchScalarGridSpec(
            num_scalar_prefetch=1,
            grid=grid,
            in_specs=[pl.BlockSpec(memory_space=pl.ANY)],    # table left in HBM
            out_specs=out_spec,
            scratch_shapes=[pltpu.SemaphoreType.DMA(())],
        )
        vmem_needed = 2 * out_tile_bytes + (4 << 20)
        # Per-row DMA issue splits cleanly across v7x's two TensorCores.
        dims = ("parallel",)
    else:
        kernel = _gather_vmem_kernel
        grid_spec = pltpu.PrefetchScalarGridSpec(
            num_scalar_prefetch=1,
            grid=grid,
            in_specs=[
                # Whole table resident in VMEM; constant block index, so a
                # single buffer suffices (halves the table's VMEM footprint).
                pl.BlockSpec((nsample, width), lambda i, idx_ref: (0, 0),
                             pipeline_mode=pl.Buffered(1)),
            ],
            out_specs=out_spec,
        )
        vmem_needed = table_bytes + 2 * out_tile_bytes + (4 << 20)
        # "arbitrary": don't let each v7x TensorCore pull its own table copy
        # into VMEM (would double the dominant HBM read).  No effect on v5e/v6e.
        dims = ("arbitrary",)

    vmem_limit = int(min(int(0.9 * cap), max(32 * 1024 * 1024, vmem_needed)))

    return pl.pallas_call(
        kernel,
        out_shape=jax.ShapeDtypeStruct((b_pad, width), z32.dtype),
        grid_spec=grid_spec,
        compiler_params=pltpu.CompilerParams(
            dimension_semantics=dims,
            vmem_limit_bytes=vmem_limit,
        ),
    )(idx_pad, z32)


# ----------------------------------------------------------------------------
# Module
# ----------------------------------------------------------------------------
class RepresentationLayer:
    """JAX/Pallas port of scDGD RepresentationLayer (forward / __getitem__).

    z has shape (nsample, nrep), initialized from N(mean, stddev) or `values`.
    forward(idx) == z[idx]; forward(None) == z.  `table_dtype=jnp.bfloat16`
    optionally stores the kernel-side table in bf16 (the f32 master copy `z`
    is kept; gathered rows are then returned in bf16).
    """

    def __init__(self, nrep, nsample, init=(0.0, 1.0), values=None, key=None,
                 table_dtype=jnp.float32):
        if values is None:
            self.nrep = int(nrep)
            self.nsample = int(nsample)
            self.mean, self.stddev = init[0], init[1]
            if key is None:
                key = jax.random.PRNGKey(0)
            self.z = (self.mean
                      + self.stddev * jax.random.normal(
                          key, (self.nsample, self.nrep), dtype=jnp.float32))
        else:
            values = jnp.asarray(values, dtype=jnp.float32)
            self.nrep = int(values.shape[-1])
            self.nsample = int(values.shape[0])
            self.mean, self.stddev = None, None
            self.z = values

        self._table_dtype = jnp.dtype(table_dtype)
        itemsize = self._table_dtype.itemsize
        if itemsize not in (2, 4):
            raise ValueError("table_dtype must be a 16-bit or 32-bit type")
        self._packed = (itemsize == 2)

        # Pad nrep so the 32-bit kernel view is lane-dense (multiple of 128):
        # 128 cols for 32-bit storage, 256 for 16-bit (packed in pairs).
        pad_to = _LANE * (4 // itemsize)
        self._nrep_pad = _round_up(self.nrep, pad_to)
        z_k = self.z.astype(self._table_dtype)
        if self._nrep_pad != self.nrep:
            z_k = jnp.pad(z_k, ((0, 0), (0, self._nrep_pad - self.nrep)))
        if self._packed:
            self._z_kern32 = lax.bitcast_convert_type(
                z_k.reshape(self.nsample, self._nrep_pad // 2, 2), jnp.uint32)
        else:
            self._z_kern32 = z_k

        # VMEM-residency budget (generation-aware); leaves room for out tiles.
        self._vmem_table_budget = int(0.6 * _vmem_capacity_bytes())

        # TODO(synk): update()/zero_grad()/fix()/unfix()/rescale() are
        # optimizer-side parameter mutation, not forward-pass compute.

    # -- one padded chunk (<= _MAX_ROWS_PER_CALL rows) --------------------
    def _gather_chunk(self, flat_chunk, use_hbm):
        n = int(flat_chunk.shape[0])
        n8 = _round_up(n, _SUBLANE)
        tb = _pick_tile(n8)
        n_pad = _round_up(n8, tb)
        if n_pad != n:
            flat_chunk = jnp.pad(flat_chunk, (0, n_pad - n))   # pad gathers row 0
        out = _gather_rows(self._z_kern32, flat_chunk, tb=tb, use_hbm=use_hbm)
        return out[:n]

    def forward(self, idx=None, *, force_path=None):
        if idx is None:
            # Identity path: return the master table (no kernel round trip).
            return self.z

        idx = jnp.asarray(idx)
        idx_shape = idx.shape
        flat = idx.reshape(-1).astype(jnp.int32)
        batch = int(flat.shape[0])
        if batch == 0:
            return jnp.zeros(idx_shape + (self.nrep,), dtype=self._table_dtype)

        # Torch-style negative indices, then clamp so the kernel can never do
        # an unchecked OOB VMEM/HBM read (note: silently clamps true OOB).
        flat = jnp.where(flat < 0, flat + self.nsample, flat)
        flat = jnp.clip(flat, 0, self.nsample - 1)

        # Traffic-based path selection: keep the table VMEM-resident only when
        # the gathered bytes are a sizable fraction of the table (the table is
        # re-streamed from HBM on every call on that path) and it fits VMEM.
        row_bytes = self._nrep_pad * self._table_dtype.itemsize
        table_bytes = self.nsample * row_bytes
        if force_path is None:
            use_hbm = not (table_bytes <= self._vmem_table_budget
                           and batch * row_bytes * 8 >= table_bytes)
        else:
            use_hbm = (force_path == "hbm")

        pieces = [self._gather_chunk(flat[s:s + _MAX_ROWS_PER_CALL], use_hbm)
                  for s in range(0, batch, _MAX_ROWS_PER_CALL)]
        out32 = pieces[0] if len(pieces) == 1 else jnp.concatenate(pieces, axis=0)

        if self._packed:
            out = lax.bitcast_convert_type(out32, self._table_dtype)
            out = out.reshape(out.shape[0], -1)
        else:
            out = out32
        out = out[:, :self.nrep]
        return out.reshape(idx_shape + (self.nrep,))

    def __call__(self, idx=None, **kwargs):
        return self.forward(idx, **kwargs)

    def __getitem__(self, idx):
        return self.forward(idx)


# ----------------------------------------------------------------------------
# Demo / self-test
# ----------------------------------------------------------------------------
if __name__ == "__main__":
    key = jax.random.PRNGKey(0)
    k0, k1, k2, k3, k4, k5 = jax.random.split(key, 6)

    nsample, nrep, batch = 64, 128, 8
    layer = RepresentationLayer(nrep=nrep, nsample=nsample, init=(0.0, 1.0), key=k0)
    idx = jax.random.randint(k1, (batch,), 0, nsample, dtype=jnp.int32)
    ref = layer.z[idx]

    # 1) auto path (batch covers >= 1/8 of the table -> VMEM-resident gather)
    out = jax.block_until_ready(layer(idx))
    assert out.shape == (batch, nrep)
    assert jnp.allclose(out, ref), "VMEM gather mismatch vs. z[idx]"

    # 2) forced HBM per-row-DMA path (single aggregate wait per tile)
    out_hbm = jax.block_until_ready(layer.forward(idx, force_path="hbm"))
    assert jnp.allclose(out_hbm, ref), "HBM gather mismatch vs. z[idx]"

    # 3) torch-style negative indices
    neg = jnp.array([-1, -2, 0, 5, 63, 7, 1, 2], dtype=jnp.int32)
    assert jnp.allclose(jax.block_until_ready(layer(neg)), layer.z[neg]), \
        "negative-index mismatch"

    # 4) awkward batch size (adaptive tile, multi-step grid) on both paths
    idx20 = jax.random.randint(k2, (20,), 0, nsample, dtype=jnp.int32)
    ref20 = layer.z[idx20]
    assert jnp.allclose(jax.block_until_ready(layer(idx20)), ref20)
    assert jnp.allclose(
        jax.block_until_ready(layer.forward(idx20, force_path="hbm")), ref20)

    # 5) 2-D index array (pad / slice / reshape path)
    idx2 = idx[:6].reshape(2, 3)
    out2 = jax.block_until_ready(layer(idx2))
    assert out2.shape == (2, 3, nrep)
    assert jnp.allclose(out2, layer.z[idx2]), "2-D index mismatch"

    # 6) realistic small nrep (< 128): lane-padded table, column slice on output
    vals = jax.random.normal(k3, (16, 20), dtype=jnp.float32)
    layer2 = RepresentationLayer(nrep=20, nsample=16, values=vals)
    idx_s = jnp.array([0, 3, 15, 7, 1], dtype=jnp.int32)
    out_s = jax.block_until_ready(layer2[idx_s])
    assert out_s.shape == (5, 20)
    assert jnp.allclose(out_s, vals[idx_s]), "small-nrep gather mismatch"

    # 7) opt-in bfloat16 table (halved HBM bytes); small batch -> HBM path,
    #    plus a forced VMEM run for coverage of the packed 32-bit view.
    vals_b = jax.random.normal(k4, (256, 32), dtype=jnp.float32)
    layer3 = RepresentationLayer(nrep=32, nsample=256, values=vals_b,
                                 table_dtype=jnp.bfloat16)
    idx_b = jax.random.randint(k5, (5,), 0, 256, dtype=jnp.int32)
    ref_b = vals_b.astype(jnp.bfloat16)[idx_b]
    out_b = jax.block_until_ready(layer3(idx_b))
    assert out_b.dtype == jnp.bfloat16 and jnp.array_equal(out_b, ref_b), \
        "bf16 HBM gather mismatch"
    out_bv = jax.block_until_ready(layer3.forward(idx_b, force_path="vmem"))
    assert jnp.array_equal(out_bv, ref_b), "bf16 VMEM gather mismatch"

    # 8) idx=None returns the (float32 master) table itself
    full = jax.block_until_ready(layer(None))
    assert full.shape == (nsample, nrep) and jnp.allclose(full, layer.z)

    print("KERNEL_OK")
</pallas_src>

<mosaic_0001>
module attributes {stable_mosaic.version = 11 : i64} {
  func.func @_gather_vmem_kernel(%arg0: i32, %arg1: memref<8xi32, #tpu.memory_space<smem>>, %arg2: memref<64x128xf32, #tpu.memory_space<vmem>>, %arg3: memref<8x128xf32, #tpu.memory_space<vmem>>) attributes {dimension_semantics = [#tpu.dimension_semantics<arbitrary>], iteration_bounds = array<i64: 1>, scalar_prefetch = 1 : i64, scratch_operands = 0 : i64, tpu.core_type = #tpu.core_type<tc>, window_params = [{pipeline_mode = #tpu.pipeline_mode<synchronous>, transform_indices = @transform_0, window_bounds = array<i64: 64, 128>}, {transform_indices = @transform_1, window_bounds = array<i64: 8, 128>}]} {
    %c8_i32 = arith.constant 8 : i32
    %0 = arith.muli %arg0, %c8_i32 : i32
    %c0_i32 = arith.constant 0 : i32
    %1 = arith.addi %0, %c0_i32 : i32
    %2 = arith.index_cast %1 : i32 to index
    %3 = memref.load %arg1[%2] : memref<8xi32, #tpu.memory_space<smem>>
    %4 = arith.index_cast %3 : i32 to index
    %c0 = arith.constant 0 : index
    %5 = vector.load %arg2[%4, %c0] : memref<64x128xf32, #tpu.memory_space<vmem>>, vector<1x128xf32>
    %6 = arith.index_cast %c0_i32 : i32 to index
    %c0_0 = arith.constant 0 : index
    %7 = vector.load %arg3[%6, %c0_0] : memref<8x128xf32, #tpu.memory_space<vmem>>, vector<1x128xf32>
    tpu.vector_store %arg3[%6, %c0_0], %5 {strides = array<i32>} : memref<8x128xf32, #tpu.memory_space<vmem>>, vector<1x128xf32>,
    %c1_i32 = arith.constant 1 : i32
    %8 = arith.addi %0, %c1_i32 : i32
    %9 = arith.index_cast %8 : i32 to index
    %10 = memref.load %arg1[%9] : memref<8xi32, #tpu.memory_space<smem>>
    %11 = arith.index_cast %10 : i32 to index
    %c0_1 = arith.constant 0 : index
    %12 = vector.load %arg2[%11, %c0_1] : memref<64x128xf32, #tpu.memory_space<vmem>>, vector<1x128xf32>
    %13 = arith.index_cast %c1_i32 : i32 to index
    %c0_2 = arith.constant 0 : index
    %14 = vector.load %arg3[%13, %c0_2] : memref<8x128xf32, #tpu.memory_space<vmem>>, vector<1x128xf32>
    tpu.vector_store %arg3[%13, %c0_2], %12 {strides = array<i32>} : memref<8x128xf32, #tpu.memory_space<vmem>>, vector<1x128xf32>,
    %c2_i32 = arith.constant 2 : i32
    %15 = arith.addi %0, %c2_i32 : i32
    %16 = arith.index_cast %15 : i32 to index
    %17 = memref.load %arg1[%16] : memref<8xi32, #tpu.memory_space<smem>>
    %18 = arith.index_cast %17 : i32 to index
    %c0_3 = arith.constant 0 : index
    %19 = vector.load %arg2[%18, %c0_3] : memref<64x128xf32, #tpu.memory_space<vmem>>, vector<1x128xf32>
    %20 = arith.index_cast %c2_i32 : i32 to index
    %c0_4 = arith.constant 0 : index
    %21 = vector.load %arg3[%20, %c0_4] : memref<8x128xf32, #tpu.memory_space<vmem>>, vector<1x128xf32>
    tpu.vector_store %arg3[%20, %c0_4], %19 {strides = array<i32>} : memref<8x128xf32, #tpu.memory_space<vmem>>, vector<1x128xf32>,
    %c3_i32 = arith.constant 3 : i32
    %22 = arith.addi %0, %c3_i32 : i32
    %23 = arith.index_cast %22 : i32 to index
    %24 = memref.load %arg1[%23] : memref<8xi32, #tpu.memory_space<smem>>
    %25 = arith.index_cast %24 : i32 to index
    %c0_5 = arith.constant 0 : index
    %26 = vector.load %arg2[%25, %c0_5] : memref<64x128xf32, #tpu.memory_space<vmem>>, vector<1x128xf32>
    %27 = arith.index_cast %c3_i32 : i32 to index
    %c0_6 = arith.constant 0 : index
    %28 = vector.load %arg3[%27, %c0_6] : memref<8x128xf32, #tpu.memory_space<vmem>>, vector<1x128xf32>
    tpu.vector_store %arg3[%27, %c0_6], %26 {strides = array<i32>} : memref<8x128xf32, #tpu.memory_space<vmem>>, vector<1x128xf32>,
    %c4_i32 = arith.constant 4 : i32
    %29 = arith.addi %0, %c4_i32 : i32
    %30 = arith.index_cast %29 : i32 to index
    %31 = memref.load %arg1[%30] : memref<8xi32, #tpu.memory_space<smem>>
    %32 = arith.index_cast %31 : i32 to index
    %c0_7 = arith.constant 0 : index
    %33 = vector.load %arg2[%32, %c0_7] : memref<64x128xf32, #tpu.memory_space<vmem>>, vector<1x128xf32>
    %34 = arith.index_cast %c4_i32 : i32 to index
    %c0_8 = arith.constant 0 : index
    %35 = vector.load %arg3[%34, %c0_8] : memref<8x128xf32, #tpu.memory_space<vmem>>, vector<1x128xf32>
    tpu.vector_store %arg3[%34, %c0_8], %33 {strides = array<i32>} : memref<8x128xf32, #tpu.memory_space<vmem>>, vector<1x128xf32>,
    %c5_i32 = arith.constant 5 : i32
    %36 = arith.addi %0, %c5_i32 : i32
    %37 = arith.index_cast %36 : i32 to index
    %38 = memref.load %arg1[%37] : memref<8xi32, #tpu.memory_space<smem>>
    %39 = arith.index_cast %38 : i32 to index
    %c0_9 = arith.constant 0 : index
    %40 = vector.load %arg2[%39, %c0_9] : memref<64x128xf32, #tpu.memory_space<vmem>>, vector<1x128xf32>
    %41 = arith.index_cast %c5_i32 : i32 to index
    %c0_10 = arith.constant 0 : index
    %42 = vector.load %arg3[%41, %c0_10] : memref<8x128xf32, #tpu.memory_space<vmem>>, vector<1x128xf32>
    tpu.vector_store %arg3[%41, %c0_10], %40 {strides = array<i32>} : memref<8x128xf32, #tpu.memory_space<vmem>>, vector<1x128xf32>,
    %c6_i32 = arith.constant 6 : i32
    %43 = arith.addi %0, %c6_i32 : i32
    %44 = arith.index_cast %43 : i32 to index
    %45 = memref.load %arg1[%44] : memref<8xi32, #tpu.memory_space<smem>>
    %46 = arith.index_cast %45 : i32 to index
    %c0_11 = arith.constant 0 : index
    %47 = vector.load %arg2[%46, %c0_11] : memref<64x128xf32, #tpu.memory_space<vmem>>, vector<1x128xf32>
    %48 = arith.index_cast %c6_i32 : i32 to index
    %c0_12 = arith.constant 0 : index
    %49 = vector.load %arg3[%48, %c0_12] : memref<8x128xf32, #tpu.memory_space<vmem>>, vector<1x128xf32>
    tpu.vector_store %arg3[%48, %c0_12], %47 {strides = array<i32>} : memref<8x128xf32, #tpu.memory_space<vmem>>, vector<1x128xf32>,
    %c7_i32 = arith.constant 7 : i32
    %50 = arith.addi %0, %c7_i32 : i32
    %51 = arith.index_cast %50 : i32 to index
    %52 = memref.load %arg1[%51] : memref<8xi32, #tpu.memory_space<smem>>
    %53 = arith.index_cast %52 : i32 to index
    %c0_13 = arith.constant 0 : index
    %54 = vector.load %arg2[%53, %c0_13] : memref<64x128xf32, #tpu.memory_space<vmem>>, vector<1x128xf32>
    %55 = arith.index_cast %c7_i32 : i32 to index
    %c0_14 = arith.constant 0 : index
    %56 = vector.load %arg3[%55, %c0_14] : memref<8x128xf32, #tpu.memory_space<vmem>>, vector<1x128xf32>
    tpu.vector_store %arg3[%55, %c0_14], %54 {strides = array<i32>} : memref<8x128xf32, #tpu.memory_space<vmem>>, vector<1x128xf32>,
    %c8_i32_15 = arith.constant 8 : i32
    return
  }
  func.func @transform_0(%arg0: i32, %arg1: memref<8xi32, #tpu.memory_space<smem>>) -> (i32, i32) {
    %c0_i32 = arith.constant 0 : i32
    %c0_i32_0 = arith.constant 0 : i32
    %c0_i32_1 = arith.constant 0 : i32
    return %c0_i32, %c0_i32_0 : i32, i32
  }
  func.func @transform_1(%arg0: i32, %arg1: memref<8xi32, #tpu.memory_space<smem>>) -> (i32, i32) {
    %c0_i32 = arith.constant 0 : i32
    %c0_i32_0 = arith.constant 0 : i32
    return %arg0, %c0_i32 : i32, i32
  }
}

</mosaic_0001>

<bundles_post_ra>
// kernel: _gather_rows.1
= control target key start
LH: loop header
LB: loop body
LE: loop exit
PB: predicated region body
PF: predicated region fallthrough
CT: control target
= control target key end

     0   :  { %s177_s12 = smov [#allocation3]   ;;  %s206_s0 = inlined_call_operand.hbm [shape: s32[8], index: 0, kind: input, shape index: {}]   ;;  %s207_s1 = inlined_call_operand.hbm [shape: f32[64,128], index: 1, kind: input, shape index: {}]   ;;  %s208_s2 = inlined_call_operand.hbm [shape: f32[8,128], index: 2, kind: output, shape index: {}]  }
   0x1   :  { %s8_s11 = sshll.u32 %s206_s0, 4  ;;  %s9_s11 = int_to_ptr.hbm [resolvable:$true] %s8_s11 }
   0x2   :  { %11 = dma.hbm_to_smem %s9_s11, 16, %s177_s12, [#allocation2] }
   0x3   :  { %171 = dma.done.wait [#allocation2], 16 }
   0x4   :  { %172 = vsyncadd [#allocation2], 4294967280 }
   0x5   :  { %14 = sfence }
   0x6   :  { %15 = vsyncpa [#allocation5], 0 }
   0x7   :  { %16 = vsyncpa [#allocation6], 0  ;;  %s21_s15 = sshll.u32 %s207_s1, 4  ;;  %s178_s16 = smov [#allocation4]   ;;  %s22_s15 = int_to_ptr.hbm [resolvable:$true] %s21_s15 }
   0x8   :  { %s23_s17 = sshll.u32 %s178_s16, 4  ;;  %s179_s18 = smov 128   ;;  %s24_s17 = int_to_ptr.vmem [resolvable:$true] %s23_s17 }
   0x9   :  { %s180_s19 = smov 8  }
   0xa   :  { %29 = dma.hbm_to_vmem [thread:$0]  %s22_s15, 1024, %s24_s17, [#allocation5], %s179_s18, %s179_s18, %s180_s19  }
   0xb   :  { %173 = dma.done.wait [#allocation5], 1024  }
   0xc   :  { %174 = vsyncadd [#allocation5], 4294966272  ;;  %s35_s0 = sld [smem:[#allocation3]]  ;;  %s181_s29 = smov [#allocation7]  }
   0xd   :  { %s99_s20 = sld [smem:[#allocation3 + $0x1]]  ;;  %s79_s30 = sshll.u32 %s181_s29, 4  ;;  %s80_s30 = int_to_ptr.vmem [resolvable:$true] %s79_s30 }
   0xe   :  { %s100_s21 = sld [smem:[#allocation3 + $0x2]]  ;;  %s81_s6 = sshll.u32 %s208_s2, 4  ;;  %s82_s6 = int_to_ptr.hbm [resolvable:$true] %s81_s6 }
   0xf   :  { %s101_s22 = sld [smem:[#allocation3 + $0x3]] }
  0x10   :  { %s102_s23 = sld [smem:[#allocation3 + $0x4]] }
  0x11   :  { %s103_s24 = sld [smem:[#allocation3 + $0x5]] }
  0x12   :  { %s104_s25 = sld [smem:[#allocation3 + $0x6]]  ;;  %s36_s26 = scalar_lea.vmem [#allocation4], %s35_s0 }
  0x13   :  { %v37_v0 = vld [vmem:[%s36_s26] sm:$0x1]  ;;  %s105_s27 = sld [smem:[#allocation3 + $0x7]]  ;;  %s41_s1 = scalar_lea.vmem [#allocation4], %s99_s20 }
  0x14   :  { %38 = vst [vmem:[#allocation7] sm:$0x1] %v37_v0  ;;  %v42_v1 = vld [vmem:[%s41_s1] sm:$0x1]  ;;  %s46_s28 = scalar_lea.vmem [#allocation4], %s100_s21 }
  0x15   :  { %43 = vst [vmem:[#allocation7 + $0x1] sm:$0x1] %v42_v1  ;;  %v47_v2 = vld [vmem:[%s46_s28] sm:$0x1]  ;;  %s51_s3 = scalar_lea.vmem [#allocation4], %s101_s22 }
  0x16   :  { %48 = vst [vmem:[#allocation7 + $0x2] sm:$0x1] %v47_v2  ;;  %v52_v3 = vld [vmem:[%s51_s3] sm:$0x1]  ;;  %s56_s7 = scalar_lea.vmem [#allocation4], %s102_s23 }
  0x17   :  { %53 = vst [vmem:[#allocation7 + $0x3] sm:$0x1] %v52_v3  ;;  %v57_v4 = vld [vmem:[%s56_s7] sm:$0x1]  ;;  %s61_s8 = scalar_lea.vmem [#allocation4], %s103_s24 }
  0x18   :  { %58 = vst [vmem:[#allocation7 + $0x4] sm:$0x1] %v57_v4  ;;  %v62_v5 = vld [vmem:[%s61_s8] sm:$0x1]  ;;  %s66_s9 = scalar_lea.vmem [#allocation4], %s104_s25 }
  0x19   :  { %63 = vst [vmem:[#allocation7 + $0x5] sm:$0x1] %v62_v5  ;;  %v67_v6 = vld [vmem:[%s66_s9] sm:$0x1]  ;;  %s71_s10 = scalar_lea.vmem [#allocation4], %s105_s27 }
  0x1a   :  { %68 = vst [vmem:[#allocation7 + $0x6] sm:$0x1] %v67_v6  ;;  %v72_v7 = vld [vmem:[%s71_s10] sm:$0x1] }
  0x1b   :  { %73 = vst [vmem:[#allocation7 + $0x7] sm:$0x1] %v72_v7 }
  0x1c   :  { %84 = dma.vmem_to_hbm [thread:$0]  %s80_s30, 128, %s82_s6, [#allocation6]  }
  0x1d   :  { %175 = dma.done.wait [#allocation6], 128  }
  0x1e   :  { %176 = vsyncadd [#allocation6], 4294967168 }
  0x1f   :  { %89 = vsyncpa [#allocation5], 1 }
  0x20   :  { %90 = vsyncpa [#allocation6], 1 }

</bundles_post_ra>
